<compile_context>
chip_gen: v7x
topology: tpu7x:2x2x1
jax: 0.10.0
libtpu: 0.0.40
codegen_flags: <defaults>
</compile_context>

<pallas_src>
import functools

import jax
import jax.numpy as jnp
from jax.experimental import pallas as pl
from jax.experimental.pallas import tpu as pltpu

LANE = 128  # lane-dense padded feature width (MXU-friendly on v5e/v6e/v7x)


# ----------------------------------------------------------------------------
# Fused kernel
# ----------------------------------------------------------------------------
def _cic_fused_kernel(project_skill, tb, *refs):
    if project_skill:
        (ss_ref, skill_ref, sw_ref, sb_ref, kw_ref, kb_ref,
         pw_ref, pb_ref, query_ref, key_ref) = refs
    else:
        (ss_ref, sw_ref, sb_ref, pw_ref, pb_ref, key_ref) = refs

    def mlp3(x, w_ref, b_ref):
        """Linear->ReLU->Linear->ReLU->Linear on VMEM-resident values.

        w_ref: (3, 128, 128) bf16 stack, b_ref: (3, 1, 128) f32 stack.
        bf16 operands, f32 MXU accumulation, f32 bias adds.
        """
        h = jnp.dot(x.astype(jnp.bfloat16), w_ref[0],
                    preferred_element_type=jnp.float32) + b_ref[0]
        h = jnp.maximum(h, 0.0)
        h = jnp.dot(h.astype(jnp.bfloat16), w_ref[1],
                    preferred_element_type=jnp.float32) + b_ref[1]
        h = jnp.maximum(h, 0.0)
        return jnp.dot(h.astype(jnp.bfloat16), w_ref[2],
                       preferred_element_type=jnp.float32) + b_ref[2]

    # One state_net pass over [state; next_state]: (2, TB, 128) -> (2*TB, 128)
    # (leading-dim merge, layout-trivial), then a static tile-aligned row split.
    x2 = ss_ref[...].reshape(2 * tb, LANE)
    enc = mlp3(x2, sw_ref, sb_ref)                       # (2*TB, 128) f32
    s_enc, ns_enc = enc[:tb], enc[tb:]

    if project_skill:
        query_ref[...] = mlp3(skill_ref[...], kw_ref, kb_ref
                              ).astype(query_ref.dtype)

    # pred_net: cat([s_enc, ns_enc], dim=1) @ W1  ==  s_enc @ W1a + ns_enc @ W1b
    # (pw_ref[0]=W1a, pw_ref[1]=W1b, pw_ref[2]=W2, pw_ref[3]=W3; padded rows of
    #  W1a/W1b are zero so encoding padding columns contribute nothing.)
    h = (jnp.dot(s_enc.astype(jnp.bfloat16), pw_ref[0],
                 preferred_element_type=jnp.float32)
         + jnp.dot(ns_enc.astype(jnp.bfloat16), pw_ref[1],
                   preferred_element_type=jnp.float32)
         + pb_ref[0])
    h = jnp.maximum(h, 0.0)
    h = jnp.dot(h.astype(jnp.bfloat16), pw_ref[2],
                preferred_element_type=jnp.float32) + pb_ref[1]
    h = jnp.maximum(h, 0.0)
    key = jnp.dot(h.astype(jnp.bfloat16), pw_ref[3],
                  preferred_element_type=jnp.float32) + pb_ref[2]
    key_ref[...] = key.astype(key_ref.dtype)


# ----------------------------------------------------------------------------
# Parameter construction & lane-dense padding / stacking (done once)
# ----------------------------------------------------------------------------
def _init_linear(rng, in_dim, out_dim, scale=0.1):
    # TODO(synk): utils.weight_init from the original repo is not available;
    # deterministic scaled-normal init is used instead (forward math unchanged).
    kw, kb = jax.random.split(rng)
    w = scale * jax.random.normal(kw, (in_dim, out_dim), dtype=jnp.float32)
    b = scale * jax.random.normal(kb, (1, out_dim), dtype=jnp.float32)
    return w, b


def _mlp_params(keys, in_dim, hid, out_dim):
    w1, b1 = _init_linear(keys[0], in_dim, hid)
    w2, b2 = _init_linear(keys[1], hid, hid)
    w3, b3 = _init_linear(keys[2], hid, out_dim)
    return (w1, b1, w2, b2, w3, b3)


def _pad_w(w):
    """Zero-pad a weight to (LANE, LANE) bf16. Padding MUST stay zero so the
    padded-K / split-layer-1 math reproduces the unpadded forward exactly."""
    assert w.shape[0] <= LANE and w.shape[1] <= LANE
    out = jnp.zeros((LANE, LANE), jnp.bfloat16)
    return out.at[:w.shape[0], :w.shape[1]].set(w.astype(jnp.bfloat16))


def _pad_b(b):
    """Zero-pad a bias to (1, LANE) f32 (padding MUST stay zero)."""
    out = jnp.zeros((1, LANE), jnp.float32)
    return out.at[:, :b.shape[1]].set(b)


def _stack_mlp(p):
    """-> ((3,128,128) bf16 weight stack, (3,1,128) f32 bias stack)."""
    w1, b1, w2, b2, w3, b3 = p
    w = jnp.stack([_pad_w(w1), _pad_w(w2), _pad_w(w3)], axis=0)
    bias = jnp.stack([_pad_b(b1), _pad_b(b2), _pad_b(b3)], axis=0)
    return w, bias


def _stack_pred(p, skill_dim):
    """pred_net layer-1 split into the halves acting on s_enc / ns_enc.
    -> ((4,128,128) bf16 weight stack, (3,1,128) f32 bias stack)."""
    w1, b1, w2, b2, w3, b3 = p
    w = jnp.stack([_pad_w(w1[:skill_dim]), _pad_w(w1[skill_dim:]),
                   _pad_w(w2), _pad_w(w3)], axis=0)
    bias = jnp.stack([_pad_b(b1), _pad_b(b2), _pad_b(b3)], axis=0)
    return w, bias


def init_cic_params(rng, obs_dim, skill_dim, hidden_dim, project_skill=True):
    assert max(obs_dim, 2 * skill_dim, hidden_dim) <= LANE
    keys = jax.random.split(rng, 9)
    raw = {
        "state_net": _mlp_params(keys[0:3], obs_dim, hidden_dim, skill_dim),
        "pred_net": _mlp_params(keys[3:6], 2 * skill_dim, hidden_dim, skill_dim),
    }
    if project_skill:
        raw["skill_net"] = _mlp_params(keys[6:9], skill_dim, hidden_dim, skill_dim)

    padded = {
        "state_net": _stack_mlp(raw["state_net"]),
        "pred_net": _stack_pred(raw["pred_net"], skill_dim),
    }
    if project_skill:
        padded["skill_net"] = _stack_mlp(raw["skill_net"])

    return {
        "raw": raw,                  # unpadded f32 params (for reference checks)
        "padded": padded,            # stacked lane-dense bf16 weights / f32 biases
        "project_skill": project_skill,
        "skill_dim": skill_dim,
    }


# ----------------------------------------------------------------------------
# CIC.forward — one fused pallas_call, batch-gridded
# ----------------------------------------------------------------------------
def cic_forward(params, state, next_state, skill):
    assert state.ndim == next_state.ndim
    project_skill = params["project_skill"]
    skill_dim = params["skill_dim"]
    pp = params["padded"]
    b = state.shape[0]

    # Keep stores unmasked / tiles aligned on all generations.
    assert b % 8 == 0, "batch must be a multiple of 8"
    tb = b if b <= 256 else 256            # >=256 rows/step for v6e/v7x MXU fill
    assert b % tb == 0
    grid = (b // tb,)

    def pad_cols(x):
        out = jnp.zeros((b, LANE), jnp.float32)
        return out.at[:, :x.shape[1]].set(x.astype(jnp.float32))

    # Stack state/next_state so state_net runs once on 2*TB rows per step.
    stacked_states = jnp.stack([pad_cols(state), pad_cols(next_state)], axis=0)

    sw, sb = pp["state_net"]
    pw, pb = pp["pred_net"]

    stacked_spec = pl.BlockSpec((2, tb, LANE), lambda i: (0, i, 0))
    act_spec = pl.BlockSpec((tb, LANE), lambda i: (i, 0))

    def resident_spec(a):
        # Full-array block, constant index_map -> stays VMEM-resident across grid.
        return pl.BlockSpec(a.shape, lambda i: (0,) * a.ndim)

    if project_skill:
        kw, kb = pp["skill_net"]
        skill_pad = pad_cols(skill)
        operands = (stacked_states, skill_pad, sw, sb, kw, kb, pw, pb)
        in_specs = [stacked_spec, act_spec,
                    resident_spec(sw), resident_spec(sb),
                    resident_spec(kw), resident_spec(kb),
                    resident_spec(pw), resident_spec(pb)]
        out_shape = (jax.ShapeDtypeStruct((b, LANE), jnp.float32),
                     jax.ShapeDtypeStruct((b, LANE), jnp.float32))
        out_specs = (act_spec, act_spec)
        n_outputs = 2
        weight_ops = (sw, sb, kw, kb, pw, pb)
    else:
        operands = (stacked_states, sw, sb, pw, pb)
        in_specs = [stacked_spec,
                    resident_spec(sw), resident_spec(sb),
                    resident_spec(pw), resident_spec(pb)]
        out_shape = jax.ShapeDtypeStruct((b, LANE), jnp.float32)
        out_specs = act_spec
        n_outputs = 1
        weight_ops = (sw, sb, pw, pb)

    # --- advisory cost (all dots are K=N=128 after padding) -----------------
    flops = 2 * (2 * b) * LANE * LANE * 3          # state_net on 2B rows
    flops += 2 * b * LANE * LANE * 4               # pred_net (split layer 1 = 2 dots)
    if project_skill:
        flops += 2 * b * LANE * LANE * 3           # skill_net
    bytes_in = sum(int(op.size) * op.dtype.itemsize for op in operands)
    bytes_out = n_outputs * b * LANE * 4
    cost = pl.CostEstimate(flops=flops, transcendentals=0,
                           bytes_accessed=bytes_in + bytes_out)

    # --- right-sized VMEM limit (double-buffered operands + slack) ----------
    weight_bytes = sum(int(a.size) * a.dtype.itemsize for a in weight_ops)
    act_bytes = (2 * tb * LANE * 4) + (tb * LANE * 4 if project_skill else 0)
    out_bytes = n_outputs * tb * LANE * 4
    vmem_bytes = 2 * (weight_bytes + act_bytes + out_bytes) + (1 << 20)
    vmem_limit = int(min(max(vmem_bytes, 2 << 20), 32 << 20))

    result = pl.pallas_call(
        functools.partial(_cic_fused_kernel, project_skill, tb),
        out_shape=out_shape,
        grid=grid,
        in_specs=in_specs,
        out_specs=out_specs,
        compiler_params=pltpu.CompilerParams(
            dimension_semantics=("parallel",),
            vmem_limit_bytes=vmem_limit),
        cost_estimate=cost,
    )(*operands)

    if project_skill:
        query_pad, key_pad = result
        query = query_pad[:, :skill_dim]
    else:
        key_pad = result
        query = skill  # nn.Identity
    key = key_pad[:, :skill_dim]
    return query, key


# ----------------------------------------------------------------------------
if __name__ == "__main__":
    batch = 8
    obs_dim = 24
    skill_dim = 16
    hidden_dim = 32
    project_skill = True

    root = jax.random.PRNGKey(0)
    k_params, k_s, k_ns, k_sk = jax.random.split(root, 4)

    params = init_cic_params(k_params, obs_dim, skill_dim, hidden_dim,
                             project_skill=project_skill)

    state = jax.random.normal(k_s, (batch, obs_dim), dtype=jnp.float32)
    next_state = jax.random.normal(k_ns, (batch, obs_dim), dtype=jnp.float32)
    skill = jax.random.normal(k_sk, (batch, skill_dim), dtype=jnp.float32)

    query, key = cic_forward(params, state, next_state, skill)
    jax.block_until_ready((query, key))

    assert query.shape == (batch, skill_dim)
    assert key.shape == (batch, skill_dim)

    # Reference (plain JAX) mirroring the kernel's bf16-weight / f32-accum math.
    def mlp3_ref(x, p):
        w1, b1, w2, b2, w3, b3 = p
        h = jnp.dot(x.astype(jnp.bfloat16), w1.astype(jnp.bfloat16),
                    preferred_element_type=jnp.float32) + b1
        h = jnp.maximum(h, 0.0)
        h = jnp.dot(h.astype(jnp.bfloat16), w2.astype(jnp.bfloat16),
                    preferred_element_type=jnp.float32) + b2
        h = jnp.maximum(h, 0.0)
        return jnp.dot(h.astype(jnp.bfloat16), w3.astype(jnp.bfloat16),
                       preferred_element_type=jnp.float32) + b3

    raw = params["raw"]
    enc_s = mlp3_ref(state, raw["state_net"])
    enc_ns = mlp3_ref(next_state, raw["state_net"])
    q_ref = mlp3_ref(skill, raw["skill_net"]) if project_skill else skill
    k_ref = mlp3_ref(jnp.concatenate([enc_s, enc_ns], axis=1), raw["pred_net"])

    assert jnp.allclose(query, q_ref, atol=5e-4, rtol=1e-3)
    assert jnp.allclose(key, k_ref, atol=5e-4, rtol=1e-3)

    print("KERNEL_OK")
</pallas_src>

<mosaic_0001>
module attributes {stable_mosaic.version = 11 : i64} {
  func.func @_cic_fused_kernel(%arg0: i32, %arg1: memref<2x8x128xf32, #tpu.memory_space<vmem>>, %arg2: memref<8x128xf32, #tpu.memory_space<vmem>>, %arg3: memref<3x128x128xbf16, #tpu.memory_space<vmem>>, %arg4: memref<3x1x128xf32, #tpu.memory_space<vmem>>, %arg5: memref<3x128x128xbf16, #tpu.memory_space<vmem>>, %arg6: memref<3x1x128xf32, #tpu.memory_space<vmem>>, %arg7: memref<4x128x128xbf16, #tpu.memory_space<vmem>>, %arg8: memref<3x1x128xf32, #tpu.memory_space<vmem>>, %arg9: memref<8x128xf32, #tpu.memory_space<vmem>>, %arg10: memref<8x128xf32, #tpu.memory_space<vmem>>) attributes {dimension_semantics = [#tpu.dimension_semantics<parallel>], iteration_bounds = array<i64: 1>, scalar_prefetch = 0 : i64, scratch_operands = 0 : i64, tpu.core_type = #tpu.core_type<tc>, window_params = [{transform_indices = @transform_0, window_bounds = array<i64: 2, 8, 128>}, {transform_indices = @transform_1, window_bounds = array<i64: 8, 128>}, {pipeline_mode = #tpu.pipeline_mode<synchronous>, transform_indices = @transform_2, window_bounds = array<i64: 3, 128, 128>}, {pipeline_mode = #tpu.pipeline_mode<synchronous>, transform_indices = @transform_3, window_bounds = array<i64: 3, 1, 128>}, {pipeline_mode = #tpu.pipeline_mode<synchronous>, transform_indices = @transform_4, window_bounds = array<i64: 3, 128, 128>}, {pipeline_mode = #tpu.pipeline_mode<synchronous>, transform_indices = @transform_5, window_bounds = array<i64: 3, 1, 128>}, {pipeline_mode = #tpu.pipeline_mode<synchronous>, transform_indices = @transform_6, window_bounds = array<i64: 4, 128, 128>}, {pipeline_mode = #tpu.pipeline_mode<synchronous>, transform_indices = @transform_7, window_bounds = array<i64: 3, 1, 128>}, {transform_indices = @transform_8, window_bounds = array<i64: 8, 128>}, {transform_indices = @transform_9, window_bounds = array<i64: 8, 128>}]} {
    %c0 = arith.constant 0 : index
    %c0_0 = arith.constant 0 : index
    %c0_1 = arith.constant 0 : index
    %0 = vector.load %arg1[%c0, %c0_0, %c0_1] : memref<2x8x128xf32, #tpu.memory_space<vmem>>, vector<2x8x128xf32>
    %1 = vector.shape_cast %0 : vector<2x8x128xf32> to vector<16x128xf32>
    %2 = arith.truncf %1 : vector<16x128xf32> to vector<16x128xbf16>
    %c0_2 = arith.constant 0 : index
    %c0_3 = arith.constant 0 : index
    %c0_4 = arith.constant 0 : index
    %3 = vector.load %arg3[%c0_2, %c0_3, %c0_4] : memref<3x128x128xbf16, #tpu.memory_space<vmem>>, vector<1x128x128xbf16>
    %4 = vector.shape_cast %3 : vector<1x128x128xbf16> to vector<128x128xbf16>
    %cst = arith.constant dense<0.000000e+00> : vector<16x128xf32>
    %5 = tpu.matmul %2, %4, %cst {dimension_numbers = #tpu.dot_dimension_numbers<[1], [0], [0], [1], [0, 0, 1, 1], [], []>} : vector<16x128xbf16>, vector<128x128xbf16>, vector<16x128xf32> -> vector<16x128xf32>
    %c0_5 = arith.constant 0 : index
    %c0_6 = arith.constant 0 : index
    %c0_7 = arith.constant 0 : index
    %6 = vector.load %arg4[%c0_5, %c0_6, %c0_7] : memref<3x1x128xf32, #tpu.memory_space<vmem>>, vector<1x1x128xf32>
    %7 = vector.shape_cast %6 : vector<1x1x128xf32> to vector<1x128xf32>
    %8 = vector.broadcast %7 : vector<1x128xf32> to vector<16x128xf32>
    %9 = arith.addf %5, %8 : vector<16x128xf32>
    %cst_8 = arith.constant 0.000000e+00 : f32
    %10 = vector.broadcast %cst_8 : f32 to vector<16x128xf32>
    %11 = arith.maximumf %9, %10 : vector<16x128xf32>
    %12 = arith.truncf %11 : vector<16x128xf32> to vector<16x128xbf16>
    %c1 = arith.constant 1 : index
    %c0_9 = arith.constant 0 : index
    %c0_10 = arith.constant 0 : index
    %13 = vector.load %arg3[%c1, %c0_9, %c0_10] : memref<3x128x128xbf16, #tpu.memory_space<vmem>>, vector<1x128x128xbf16>
    %14 = vector.shape_cast %13 : vector<1x128x128xbf16> to vector<128x128xbf16>
    %cst_11 = arith.constant dense<0.000000e+00> : vector<16x128xf32>
    %15 = tpu.matmul %12, %14, %cst_11 {dimension_numbers = #tpu.dot_dimension_numbers<[1], [0], [0], [1], [0, 0, 1, 1], [], []>} : vector<16x128xbf16>, vector<128x128xbf16>, vector<16x128xf32> -> vector<16x128xf32>
    %c1_12 = arith.constant 1 : index
    %c0_13 = arith.constant 0 : index
    %c0_14 = arith.constant 0 : index
    %16 = vector.load %arg4[%c1_12, %c0_13, %c0_14] : memref<3x1x128xf32, #tpu.memory_space<vmem>>, vector<1x1x128xf32>
    %17 = vector.shape_cast %16 : vector<1x1x128xf32> to vector<1x128xf32>
    %18 = vector.broadcast %17 : vector<1x128xf32> to vector<16x128xf32>
    %19 = arith.addf %15, %18 : vector<16x128xf32>
    %cst_15 = arith.constant 0.000000e+00 : f32
    %20 = vector.broadcast %cst_15 : f32 to vector<16x128xf32>
    %21 = arith.maximumf %19, %20 : vector<16x128xf32>
    %22 = arith.truncf %21 : vector<16x128xf32> to vector<16x128xbf16>
    %c2 = arith.constant 2 : index
    %c0_16 = arith.constant 0 : index
    %c0_17 = arith.constant 0 : index
    %23 = vector.load %arg3[%c2, %c0_16, %c0_17] : memref<3x128x128xbf16, #tpu.memory_space<vmem>>, vector<1x128x128xbf16>
    %24 = vector.shape_cast %23 : vector<1x128x128xbf16> to vector<128x128xbf16>
    %cst_18 = arith.constant dense<0.000000e+00> : vector<16x128xf32>
    %25 = tpu.matmul %22, %24, %cst_18 {dimension_numbers = #tpu.dot_dimension_numbers<[1], [0], [0], [1], [0, 0, 1, 1], [], []>} : vector<16x128xbf16>, vector<128x128xbf16>, vector<16x128xf32> -> vector<16x128xf32>
    %c2_19 = arith.constant 2 : index
    %c0_20 = arith.constant 0 : index
    %c0_21 = arith.constant 0 : index
    %26 = vector.load %arg4[%c2_19, %c0_20, %c0_21] : memref<3x1x128xf32, #tpu.memory_space<vmem>>, vector<1x1x128xf32>
    %27 = vector.shape_cast %26 : vector<1x1x128xf32> to vector<1x128xf32>
    %28 = vector.broadcast %27 : vector<1x128xf32> to vector<16x128xf32>
    %29 = arith.addf %25, %28 : vector<16x128xf32>
    %30 = vector.extract_strided_slice %29 {offsets = [0, 0], sizes = [8, 128], strides = [1, 1]} : vector<16x128xf32> to vector<8x128xf32>
    %31 = vector.extract_strided_slice %29 {offsets = [8, 0], sizes = [8, 128], strides = [1, 1]} : vector<16x128xf32> to vector<8x128xf32>
    %c0_22 = arith.constant 0 : index
    %c0_23 = arith.constant 0 : index
    %32 = vector.load %arg2[%c0_22, %c0_23] : memref<8x128xf32, #tpu.memory_space<vmem>>, vector<8x128xf32>
    %33 = arith.truncf %32 : vector<8x128xf32> to vector<8x128xbf16>
    %c0_24 = arith.constant 0 : index
    %c0_25 = arith.constant 0 : index
    %c0_26 = arith.constant 0 : index
    %34 = vector.load %arg5[%c0_24, %c0_25, %c0_26] : memref<3x128x128xbf16, #tpu.memory_space<vmem>>, vector<1x128x128xbf16>
    %35 = vector.shape_cast %34 : vector<1x128x128xbf16> to vector<128x128xbf16>
    %cst_27 = arith.constant dense<0.000000e+00> : vector<8x128xf32>
    %36 = tpu.matmul %33, %35, %cst_27 {dimension_numbers = #tpu.dot_dimension_numbers<[1], [0], [0], [1], [0, 0, 1, 1], [], []>} : vector<8x128xbf16>, vector<128x128xbf16>, vector<8x128xf32> -> vector<8x128xf32>
    %c0_28 = arith.constant 0 : index
    %c0_29 = arith.constant 0 : index
    %c0_30 = arith.constant 0 : index
    %37 = vector.load %arg6[%c0_28, %c0_29, %c0_30] : memref<3x1x128xf32, #tpu.memory_space<vmem>>, vector<1x1x128xf32>
    %38 = vector.shape_cast %37 : vector<1x1x128xf32> to vector<1x128xf32>
    %39 = vector.broadcast %38 : vector<1x128xf32> to vector<8x128xf32>
    %40 = arith.addf %36, %39 : vector<8x128xf32>
    %cst_31 = arith.constant 0.000000e+00 : f32
    %41 = vector.broadcast %cst_31 : f32 to vector<8x128xf32>
    %42 = arith.maximumf %40, %41 : vector<8x128xf32>
    %43 = arith.truncf %42 : vector<8x128xf32> to vector<8x128xbf16>
    %c1_32 = arith.constant 1 : index
    %c0_33 = arith.constant 0 : index
    %c0_34 = arith.constant 0 : index
    %44 = vector.load %arg5[%c1_32, %c0_33, %c0_34] : memref<3x128x128xbf16, #tpu.memory_space<vmem>>, vector<1x128x128xbf16>
    %45 = vector.shape_cast %44 : vector<1x128x128xbf16> to vector<128x128xbf16>
    %cst_35 = arith.constant dense<0.000000e+00> : vector<8x128xf32>
    %46 = tpu.matmul %43, %45, %cst_35 {dimension_numbers = #tpu.dot_dimension_numbers<[1], [0], [0], [1], [0, 0, 1, 1], [], []>} : vector<8x128xbf16>, vector<128x128xbf16>, vector<8x128xf32> -> vector<8x128xf32>
    %c1_36 = arith.constant 1 : index
    %c0_37 = arith.constant 0 : index
    %c0_38 = arith.constant 0 : index
    %47 = vector.load %arg6[%c1_36, %c0_37, %c0_38] : memref<3x1x128xf32, #tpu.memory_space<vmem>>, vector<1x1x128xf32>
    %48 = vector.shape_cast %47 : vector<1x1x128xf32> to vector<1x128xf32>
    %49 = vector.broadcast %48 : vector<1x128xf32> to vector<8x128xf32>
    %50 = arith.addf %46, %49 : vector<8x128xf32>
    %cst_39 = arith.constant 0.000000e+00 : f32
    %51 = vector.broadcast %cst_39 : f32 to vector<8x128xf32>
    %52 = arith.maximumf %50, %51 : vector<8x128xf32>
    %53 = arith.truncf %52 : vector<8x128xf32> to vector<8x128xbf16>
    %c2_40 = arith.constant 2 : index
    %c0_41 = arith.constant 0 : index
    %c0_42 = arith.constant 0 : index
    %54 = vector.load %arg5[%c2_40, %c0_41, %c0_42] : memref<3x128x128xbf16, #tpu.memory_space<vmem>>, vector<1x128x128xbf16>
    %55 = vector.shape_cast %54 : vector<1x128x128xbf16> to vector<128x128xbf16>
    %cst_43 = arith.constant dense<0.000000e+00> : vector<8x128xf32>
    %56 = tpu.matmul %53, %55, %cst_43 {dimension_numbers = #tpu.dot_dimension_numbers<[1], [0], [0], [1], [0, 0, 1, 1], [], []>} : vector<8x128xbf16>, vector<128x128xbf16>, vector<8x128xf32> -> vector<8x128xf32>
    %c2_44 = arith.constant 2 : index
    %c0_45 = arith.constant 0 : index
    %c0_46 = arith.constant 0 : index
    %57 = vector.load %arg6[%c2_44, %c0_45, %c0_46] : memref<3x1x128xf32, #tpu.memory_space<vmem>>, vector<1x1x128xf32>
    %58 = vector.shape_cast %57 : vector<1x1x128xf32> to vector<1x128xf32>
    %59 = vector.broadcast %58 : vector<1x128xf32> to vector<8x128xf32>
    %60 = arith.addf %56, %59 : vector<8x128xf32>
    %c0_47 = arith.constant 0 : index
    %c0_48 = arith.constant 0 : index
    %61 = vector.load %arg9[%c0_47, %c0_48] : memref<8x128xf32, #tpu.memory_space<vmem>>, vector<8x128xf32>
    tpu.vector_store %arg9[%c0_47, %c0_48], %60 {strides = array<i32>} : memref<8x128xf32, #tpu.memory_space<vmem>>, vector<8x128xf32>,
    %62 = arith.truncf %30 : vector<8x128xf32> to vector<8x128xbf16>
    %c0_49 = arith.constant 0 : index
    %c0_50 = arith.constant 0 : index
    %c0_51 = arith.constant 0 : index
    %63 = vector.load %arg7[%c0_49, %c0_50, %c0_51] : memref<4x128x128xbf16, #tpu.memory_space<vmem>>, vector<1x128x128xbf16>
    %64 = vector.shape_cast %63 : vector<1x128x128xbf16> to vector<128x128xbf16>
    %cst_52 = arith.constant dense<0.000000e+00> : vector<8x128xf32>
    %65 = tpu.matmul %62, %64, %cst_52 {dimension_numbers = #tpu.dot_dimension_numbers<[1], [0], [0], [1], [0, 0, 1, 1], [], []>} : vector<8x128xbf16>, vector<128x128xbf16>, vector<8x128xf32> -> vector<8x128xf32>
    %66 = arith.truncf %31 : vector<8x128xf32> to vector<8x128xbf16>
    %c1_53 = arith.constant 1 : index
    %c0_54 = arith.constant 0 : index
    %c0_55 = arith.constant 0 : index
    %67 = vector.load %arg7[%c1_53, %c0_54, %c0_55] : memref<4x128x128xbf16, #tpu.memory_space<vmem>>, vector<1x128x128xbf16>
    %68 = vector.shape_cast %67 : vector<1x128x128xbf16> to vector<128x128xbf16>
    %cst_56 = arith.constant dense<0.000000e+00> : vector<8x128xf32>
    %69 = tpu.matmul %66, %68, %cst_56 {dimension_numbers = #tpu.dot_dimension_numbers<[1], [0], [0], [1], [0, 0, 1, 1], [], []>} : vector<8x128xbf16>, vector<128x128xbf16>, vector<8x128xf32> -> vector<8x128xf32>
    %70 = arith.addf %65, %69 : vector<8x128xf32>
    %c0_57 = arith.constant 0 : index
    %c0_58 = arith.constant 0 : index
    %c0_59 = arith.constant 0 : index
    %71 = vector.load %arg8[%c0_57, %c0_58, %c0_59] : memref<3x1x128xf32, #tpu.memory_space<vmem>>, vector<1x1x128xf32>
    %72 = vector.shape_cast %71 : vector<1x1x128xf32> to vector<1x128xf32>
    %73 = vector.broadcast %72 : vector<1x128xf32> to vector<8x128xf32>
    %74 = arith.addf %70, %73 : vector<8x128xf32>
    %cst_60 = arith.constant 0.000000e+00 : f32
    %75 = vector.broadcast %cst_60 : f32 to vector<8x128xf32>
    %76 = arith.maximumf %74, %75 : vector<8x128xf32>
    %77 = arith.truncf %76 : vector<8x128xf32> to vector<8x128xbf16>
    %c2_61 = arith.constant 2 : index
    %c0_62 = arith.constant 0 : index
    %c0_63 = arith.constant 0 : index
    %78 = vector.load %arg7[%c2_61, %c0_62, %c0_63] : memref<4x128x128xbf16, #tpu.memory_space<vmem>>, vector<1x128x128xbf16>
    %79 = vector.shape_cast %78 : vector<1x128x128xbf16> to vector<128x128xbf16>
    %cst_64 = arith.constant dense<0.000000e+00> : vector<8x128xf32>
    %80 = tpu.matmul %77, %79, %cst_64 {dimension_numbers = #tpu.dot_dimension_numbers<[1], [0], [0], [1], [0, 0, 1, 1], [], []>} : vector<8x128xbf16>, vector<128x128xbf16>, vector<8x128xf32> -> vector<8x128xf32>
    %c1_65 = arith.constant 1 : index
    %c0_66 = arith.constant 0 : index
    %c0_67 = arith.constant 0 : index
    %81 = vector.load %arg8[%c1_65, %c0_66, %c0_67] : memref<3x1x128xf32, #tpu.memory_space<vmem>>, vector<1x1x128xf32>
    %82 = vector.shape_cast %81 : vector<1x1x128xf32> to vector<1x128xf32>
    %83 = vector.broadcast %82 : vector<1x128xf32> to vector<8x128xf32>
    %84 = arith.addf %80, %83 : vector<8x128xf32>
    %cst_68 = arith.constant 0.000000e+00 : f32
    %85 = vector.broadcast %cst_68 : f32 to vector<8x128xf32>
    %86 = arith.maximumf %84, %85 : vector<8x128xf32>
    %87 = arith.truncf %86 : vector<8x128xf32> to vector<8x128xbf16>
    %c3 = arith.constant 3 : index
    %c0_69 = arith.constant 0 : index
    %c0_70 = arith.constant 0 : index
    %88 = vector.load %arg7[%c3, %c0_69, %c0_70] : memref<4x128x128xbf16, #tpu.memory_space<vmem>>, vector<1x128x128xbf16>
    %89 = vector.shape_cast %88 : vector<1x128x128xbf16> to vector<128x128xbf16>
    %cst_71 = arith.constant dense<0.000000e+00> : vector<8x128xf32>
    %90 = tpu.matmul %87, %89, %cst_71 {dimension_numbers = #tpu.dot_dimension_numbers<[1], [0], [0], [1], [0, 0, 1, 1], [], []>} : vector<8x128xbf16>, vector<128x128xbf16>, vector<8x128xf32> -> vector<8x128xf32>
    %c2_72 = arith.constant 2 : index
    %c0_73 = arith.constant 0 : index
    %c0_74 = arith.constant 0 : index
    %91 = vector.load %arg8[%c2_72, %c0_73, %c0_74] : memref<3x1x128xf32, #tpu.memory_space<vmem>>, vector<1x1x128xf32>
    %92 = vector.shape_cast %91 : vector<1x1x128xf32> to vector<1x128xf32>
    %93 = vector.broadcast %92 : vector<1x128xf32> to vector<8x128xf32>
    %94 = arith.addf %90, %93 : vector<8x128xf32>
    %c0_75 = arith.constant 0 : index
    %c0_76 = arith.constant 0 : index
    %95 = vector.load %arg10[%c0_75, %c0_76] : memref<8x128xf32, #tpu.memory_space<vmem>>, vector<8x128xf32>
    tpu.vector_store %arg10[%c0_75, %c0_76], %94 {strides = array<i32>} : memref<8x128xf32, #tpu.memory_space<vmem>>, vector<8x128xf32>,
    return
  }
  func.func @transform_0(%arg0: i32) -> (i32, i32, i32) {
    %c0_i32 = arith.constant 0 : i32
    %c0_i32_0 = arith.constant 0 : i32
    %c0_i32_1 = arith.constant 0 : i32
    return %c0_i32, %arg0, %c0_i32_0 : i32, i32, i32
  }
  func.func @transform_1(%arg0: i32) -> (i32, i32) {
    %c0_i32 = arith.constant 0 : i32
    %c0_i32_0 = arith.constant 0 : i32
    return %arg0, %c0_i32 : i32, i32
  }
  func.func @transform_2(%arg0: i32) -> (i32, i32, i32) {
    %c0_i32 = arith.constant 0 : i32
    %c0_i32_0 = arith.constant 0 : i32
    %c0_i32_1 = arith.constant 0 : i32
    %c0_i32_2 = arith.constant 0 : i32
    return %c0_i32, %c0_i32_0, %c0_i32_1 : i32, i32, i32
  }
  func.func @transform_3(%arg0: i32) -> (i32, i32, i32) {
    %c0_i32 = arith.constant 0 : i32
    %c0_i32_0 = arith.constant 0 : i32
    %c0_i32_1 = arith.constant 0 : i32
    %c0_i32_2 = arith.constant 0 : i32
    return %c0_i32, %c0_i32_0, %c0_i32_1 : i32, i32, i32
  }
  func.func @transform_4(%arg0: i32) -> (i32, i32, i32) {
    %c0_i32 = arith.constant 0 : i32
    %c0_i32_0 = arith.constant 0 : i32
    %c0_i32_1 = arith.constant 0 : i32
    %c0_i32_2 = arith.constant 0 : i32
    return %c0_i32, %c0_i32_0, %c0_i32_1 : i32, i32, i32
  }
  func.func @transform_5(%arg0: i32) -> (i32, i32, i32) {
    %c0_i32 = arith.constant 0 : i32
    %c0_i32_0 = arith.constant 0 : i32
    %c0_i32_1 = arith.constant 0 : i32
    %c0_i32_2 = arith.constant 0 : i32
    return %c0_i32, %c0_i32_0, %c0_i32_1 : i32, i32, i32
  }
  func.func @transform_6(%arg0: i32) -> (i32, i32, i32) {
    %c0_i32 = arith.constant 0 : i32
    %c0_i32_0 = arith.constant 0 : i32
    %c0_i32_1 = arith.constant 0 : i32
    %c0_i32_2 = arith.constant 0 : i32
    return %c0_i32, %c0_i32_0, %c0_i32_1 : i32, i32, i32
  }
  func.func @transform_7(%arg0: i32) -> (i32, i32, i32) {
    %c0_i32 = arith.constant 0 : i32
    %c0_i32_0 = arith.constant 0 : i32
    %c0_i32_1 = arith.constant 0 : i32
    %c0_i32_2 = arith.constant 0 : i32
    return %c0_i32, %c0_i32_0, %c0_i32_1 : i32, i32, i32
  }
  func.func @transform_8(%arg0: i32) -> (i32, i32) {
    %c0_i32 = arith.constant 0 : i32
    %c0_i32_0 = arith.constant 0 : i32
    return %arg0, %c0_i32 : i32, i32
  }
  func.func @transform_9(%arg0: i32) -> (i32, i32) {
    %c0_i32 = arith.constant 0 : i32
    %c0_i32_0 = arith.constant 0 : i32
    return %arg0, %c0_i32 : i32, i32
  }
}

</mosaic_0001>

<bundles_post_ra>
// kernel: tpu_custom_call.1
= control target key start
LH: loop header
LB: loop body
LE: loop exit
PB: predicated region body
PF: predicated region fallthrough
CT: control target
= control target key end

     0   :  { %15 = vsyncpa [#allocation3], 0  ;;  %s2199_s0 = inlined_call_operand.hbm [shape: f32[2,8,128], index: 0, kind: input, shape index: {}]   ;;  %s2200_s1 = inlined_call_operand.hbm [shape: f32[8,128], index: 1, kind: input, shape index: {}]   ;;  %s2201_s2 = inlined_call_operand.hbm [shape: bf16[3,128,128], index: 2, kind: input, shape index: {}]   ;;  %s2202_s3 = inlined_call_operand.vmem [shape: f32[3,1,128], index: 3, kind: input, shape index: {}]   ;;  %s2203_s4 = inlined_call_operand.hbm [shape: bf16[3,128,128], index: 4, kind: input, shape index: {}]   ;;  %s2204_s5 = inlined_call_operand.vmem [shape: f32[3,1,128], index: 5, kind: input, shape index: {}]   ;;  %s2205_s6 = inlined_call_operand.hbm [shape: bf16[4,128,128], index: 6, kind: input, shape index: {}]   ;;  %s2206_s7 = inlined_call_operand.vmem [shape: f32[3,1,128], index: 7, kind: input, shape index: {}]   ;;  %s2207_s8 = inlined_call_operand.hbm [shape: f32[8,128], index: 8, kind: output, shape index: {0}]   ;;  %s2208_s9 = inlined_call_operand.hbm [shape: f32[8,128], index: 9, kind: output, shape index: {1}]  }
   0x1   :  { %16 = vsyncpa [#allocation6], 0 }
   0x2   :  { %17 = vsyncpa [#allocation9], 0 }
   0x3   :  { %18 = vsyncpa [#allocation4], 0 }
   0x4   :  { %19 = vsyncpa [#allocation13], 0  ;;  %s1916_s30 = smov [#allocation5]   ;;  %s1752_s13 = scalar_lea.hbm %s2200_s1, 128 }
   0x5   :  { %s38_s10 = sshll.u32 %s1916_s30, 4  ;;  %p1753_p0 = scmp.ne.s32.totalorder %s2200_s1, %s1752_s13  ;;  %s39_s10 = int_to_ptr.vmem [resolvable:$true] %s38_s10 }
   0x6   :  { %p1756_p1 = scmp.lt.u32.totalorder %s1752_s13, %s2200_s1 }
   0x8   :  { %p1758_p2 = pnand %p1756_p1, %p1753_p0 }
   0xa   :  { %1761 = shalt.err (!%p1758_p2)
}
   0xb   :  { %s1762_s18 = scalar_lea.vmem %s39_s10, 128  ;;  %p1767_p4 = scmp.lt.s32.totalorder %s39_s10, %s39_s10 }
   0xc   :  { %p1763_p3 = scmp.ne.s32.totalorder %s39_s10, %s1762_s18  ;;  %p1768_p5 = scmp.lt.s32.totalorder %s1762_s18, %s1762_s18 }
   0xe   :  { %p1769_p6 = por %p1768_p5, %p1767_p4 }
  0x10   :  { %p1770_p7 = pnand %p1769_p6, %p1763_p3 }
  0x12   :  { %1773 = shalt.err (!%p1770_p7)
}
  0x13   :  { %41 = dma.hbm_to_vmem [thread:$0]  %s2200_s1, 128, %s39_s10, [#allocation6]  }
  0x14   :  { %s1917_s21 = smov [#allocation8]   ;;  %s1918_s23 = smov [#allocation2]  }
  0x15   :  { %s61_s22 = sshll.u32 %s1917_s21, 4  ;;  %s25_s24 = sshll.u32 %s1918_s23, 4  ;;  %s62_s22 = int_to_ptr.vmem [resolvable:$true] %s61_s22  ;;  %s26_s24 = int_to_ptr.vmem [resolvable:$true] %s25_s24 }
  0x16   :  { %s1774_s27 = scalar_lea.hbm %s2203_s4, 3072 }
  0x17   :  { %p1775_p8 = scmp.ne.s32.totalorder %s2203_s4, %s1774_s27  ;;  %p1778_p9 = scmp.lt.u32.totalorder %s1774_s27, %s2203_s4 }
  0x19   :  { %p1780_p10 = pnand %p1778_p9, %p1775_p8 }
  0x1b   :  { %1783 = shalt.err (!%p1780_p10)
}
  0x1c   :  { %s1784_s1 = scalar_lea.vmem %s62_s22, 3072  ;;  %p1789_p12 = scmp.lt.s32.totalorder %s62_s22, %s62_s22 }
  0x1d   :  { %p1785_p11 = scmp.ne.s32.totalorder %s62_s22, %s1784_s1  ;;  %p1790_p13 = scmp.lt.s32.totalorder %s1784_s1, %s1784_s1 }
  0x1f   :  { %p1791_p0 = por %p1790_p13, %p1789_p12 }
  0x21   :  { %p1792_p1 = pnand %p1791_p0, %p1785_p11 }
  0x23   :  { %1795 = shalt.err (!%p1792_p1)
}
  0x24   :  { %s1919_s10 = smov 64   ;;  %s1920_s12 = smov 4  }
  0x25   :  { %67 = dma.hbm_to_vmem [thread:$0]  %s2203_s4, 3072, %s62_s22, [#allocation9], %s1919_s10, %s1919_s10, %s1920_s12  }
  0x26   :  { %s1796_s17 = scalar_lea.hbm %s2199_s0, 256 }
  0x27   :  { %p1797_p2 = scmp.ne.s32.totalorder %s2199_s0, %s1796_s17  ;;  %p1800_p3 = scmp.lt.u32.totalorder %s1796_s17, %s2199_s0 }
  0x29   :  { %p1802_p4 = pnand %p1800_p3, %p1797_p2 }
  0x2b   :  { %1805 = shalt.err (!%p1802_p4)
}
  0x2c   :  { %s1806_s23 = scalar_lea.vmem %s26_s24, 256  ;;  %p1811_p6 = scmp.lt.s32.totalorder %s26_s24, %s26_s24 }
  0x2d   :  { %p1807_p5 = scmp.ne.s32.totalorder %s26_s24, %s1806_s23  ;;  %p1812_p7 = scmp.lt.s32.totalorder %s1806_s23, %s1806_s23 }
  0x2f   :  { %p1813_p8 = por %p1812_p7, %p1811_p6 }
  0x31   :  { %p1814_p9 = pnand %p1813_p8, %p1807_p5 }
  0x33   :  { %1817 = shalt.err (!%p1814_p9)
}
  0x34   :  { %s1921_s4 = smov 128   ;;  %s1922_s22 = smov 8  }
  0x35   :  { %31 = dma.hbm_to_vmem [thread:$0]  %s2199_s0, 256, %s26_s24, [#allocation3], %s1921_s4, %s1921_s4, %s1922_s22  }
  0x36   :  { %s1923_s27 = smov [#allocation7]   ;;  %s1924_s29 = smov [#allocation10]  }
  0x37   :  { %s47_s28 = sshll.u32 %s1923_s27, 4  ;;  %s75_s30 = sshll.u32 %s1924_s29, 4  ;;  %s48_s28 = int_to_ptr.vmem [resolvable:$true] %s47_s28  ;;  %s76_s30 = int_to_ptr.vmem [resolvable:$true] %s75_s30 }
  0x38   :  { %s1818_s13 = scalar_lea.hbm %s2201_s2, 3072 }
  0x39   :  { %p1819_p10 = scmp.ne.s32.totalorder %s2201_s2, %s1818_s13  ;;  %p1822_p11 = scmp.lt.u32.totalorder %s1818_s13, %s2201_s2 }
  0x3b   :  { %p1824_p12 = pnand %p1822_p11, %p1819_p10 }
  0x3d   :  { %1827 = shalt.err (!%p1824_p12)
}
  0x3e   :  { %s1828_s0 = scalar_lea.vmem %s48_s28, 3072  ;;  %p1833_p0 = scmp.lt.s32.totalorder %s48_s28, %s48_s28 }
  0x3f   :  { %p1829_p13 = scmp.ne.s32.totalorder %s48_s28, %s1828_s0  ;;  %p1834_p1 = scmp.lt.s32.totalorder %s1828_s0, %s1828_s0 }
  0x41   :  { %p1835_p2 = por %p1834_p1, %p1833_p0 }
  0x43   :  { %p1836_p3 = pnand %p1835_p2, %p1829_p13 }
  0x45   :  { %1839 = shalt.err (!%p1836_p3)
}
  0x46   :  { %53 = dma.hbm_to_vmem [thread:$0]  %s2201_s2, 3072, %s48_s28, [#allocation6], %s1919_s10, %s1919_s10, %s1920_s12  }
  0x47   :  { %s1840_s21 = scalar_lea.hbm %s2205_s6, 4096 }
  0x48   :  { %p1841_p4 = scmp.ne.s32.totalorder %s2205_s6, %s1840_s21  ;;  %p1844_p5 = scmp.lt.u32.totalorder %s1840_s21, %s2205_s6 }
  0x4a   :  { %p1846_p6 = pnand %p1844_p5, %p1841_p4 }
  0x4c   :  { %1849 = shalt.err (!%p1846_p6)
}
  0x4d   :  { %s1850_s26 = scalar_lea.vmem %s76_s30, 4096  ;;  %p1855_p8 = scmp.lt.s32.totalorder %s76_s30, %s76_s30 }
  0x4e   :  { %p1851_p7 = scmp.ne.s32.totalorder %s76_s30, %s1850_s26  ;;  %p1856_p9 = scmp.lt.s32.totalorder %s1850_s26, %s1850_s26 }
  0x50   :  { %p1857_p10 = por %p1856_p9, %p1855_p8 }
  0x52   :  { %p1858_p11 = pnand %p1857_p10, %p1851_p7 }
  0x54   :  { %1861 = shalt.err (!%p1858_p11)
}
  0x55   :  { %81 = dma.hbm_to_vmem [thread:$0]  %s2205_s6, 4096, %s76_s30, [#allocation9], %s1919_s10, %s1919_s10, %s1920_s12  }
  0x56   :  { %1906 = dma.done.wait [#allocation3], 256  }
  0x57   :  { %1907 = vsyncadd [#allocation3], 4294967040 }
  0x58   :  { %1908 = dma.done.wait [#allocation6], 3200  }
  0x59   :  { %1909 = vsyncadd [#allocation6], 4294964096 }
  0x5a   :  { %1910 = dma.done.wait [#allocation9], 7168  }
  0x5b   :  { %1911 = vsyncadd [#allocation9], 4294960128  ;;  %v1925_v0 = vmov 0.0   ;;  %vm1926_vm0 = vmmov 0   ;;  %v1672_v1 = vld [vmem:[#allocation7] sm:$0xff]   ;;  %v1673_v2 = vld [vmem:[#allocation7 + $0x8] sm:$0xff]  }
  0x5c   :  { %1459 = vmatprep.subr.bf16.mxu0 %v1925_v0  ;;  %1475 = vmatprep.mubr.msk.bf16.mxu0 %vm1926_vm0, %v1925_v0  ;;  %v1674_v3 = vld [vmem:[#allocation7 + $0x10] sm:$0xff]   ;;  %v1680_v4 = vld [vmem:[#allocation7 + $0x40] sm:$0xff]   ;;  %v1675_v5 = vld [vmem:[#allocation7 + $0x18] sm:$0xff]   ;;  %s1927_s24 = smov [#allocation11]  }
  0x5d   :  { %1479 = vmatprep.subr.bf16.mxu1 %v1925_v0  ;;  %1495 = vmatprep.mubr.msk.bf16.mxu1 %vm1926_vm0, %v1925_v0  ;;  %v1681_v6 = vld [vmem:[#allocation7 + $0x48] sm:$0xff]   ;;  %v1676_v7 = vld [vmem:[#allocation7 + $0x20] sm:$0xff]   ;;  %v1682_v8 = vld [vmem:[#allocation7 + $0x50] sm:$0xff]   ;;  %s1249_s18 = sshll.u32 %s1927_s24, 4  ;;  %s1250_s18 = int_to_ptr.vmem [resolvable:$true] %s1249_s18 }
  0x5e   :  { %1460 = vmatpush3.bf16.msra.mxu0 %v1672_v1  ;;  %1480 = vmatpush3.bf16.msra.mxu1 %v1680_v4  ;;  %v1677_v9 = vld [vmem:[#allocation7 + $0x28] sm:$0xff]   ;;  %v1683_v10 = vld [vmem:[#allocation7 + $0x58] sm:$0xff]   ;;  %v1678_v11 = vld [vmem:[#allocation7 + $0x30] sm:$0xff]   ;;  %s1862_s19 = scalar_lea.vmem %s1250_s18, 128  ;;  %p1867_p13 = scmp.lt.s32.totalorder %s1250_s18, %s1250_s18 }
  0x5f   :  { %1461 = vmatprep.subr.bf16.mxu0 %v1925_v0  ;;  %1481 = vmatprep.subr.bf16.mxu1 %v1925_v0  ;;  %v1684_v12 = vld [vmem:[#allocation7 + $0x60] sm:$0xff]   ;;  %v1679_v13 = vld [vmem:[#allocation7 + $0x38] sm:$0xff]   ;;  %v100_v14 = vld [vmem:[#allocation2] sm:$0xff]  ;;  %p1863_p12 = scmp.ne.s32.totalorder %s1250_s18, %s1862_s19  ;;  %p1868_p0 = scmp.lt.s32.totalorder %s1862_s19, %s1862_s19 }
  0x60   :  { %v101_v15 = vld [vmem:[#allocation2 + $0x8] sm:$0xff]  ;;  %v1685_v16 = vld [vmem:[#allocation7 + $0x68] sm:$0xff]   ;;  %v1687_v19 = vld [vmem:[#allocation7 + $0x78] sm:$0xff]  }
  0x61   :  { %v102_v17 = vpack.c.bf16 %v101_v15, %v100_v14  ;;  %v1686_v18 = vld [vmem:[#allocation7 + $0x70] sm:$0xff]   ;;  %v1696_v20 = vld [vmem:[#allocation7 + $0x80] sm:$0xff]   ;;  %v1697_v21 = vld [vmem:[#allocation7 + $0x88] sm:$0xff]   ;;  %p1869_p1 = por %p1868_p0, %p1867_p13 }
  0x62   :  { %1462 = vmatpush3.bf16.msra.mxu0 %v1673_v2  ;;  %1482 = vmatpush3.bf16.msra.mxu1 %v1681_v6  ;;  %v1698_v22 = vld [vmem:[#allocation7 + $0x90] sm:$0xff]   ;;  %v1699_v23 = vld [vmem:[#allocation7 + $0x98] sm:$0xff]   ;;  %v1700_v24 = vld [vmem:[#allocation7 + $0xa0] sm:$0xff]  }
  0x63   :  { %1463 = vmatprep.subr.bf16.mxu0 %v1925_v0  ;;  %1483 = vmatprep.subr.bf16.mxu1 %v1925_v0  ;;  %v1701_v25 = vld [vmem:[#allocation7 + $0xa8] sm:$0xff]   ;;  %v1688_v35 = vld [vmem:[#allocation8] sm:$0xff]   ;;  %v1690_v38 = vld [vmem:[#allocation8 + $0x10] sm:$0xff]   ;;  %p1870_p2 = pnand %p1869_p1, %p1863_p12 }
  0x64   :  { %v1274_v26 = vld [vmem:[%s2202_s3] ss:$0 sm:$0xff]  ;;  %v1691_v39 = vld [vmem:[#allocation8 + $0x18] sm:$0xff]   ;;  %v1692_v40 = vld [vmem:[#allocation8 + $0x20] sm:$0xff]  }
  0x65   :  { %v1689_v37 = vld [vmem:[#allocation8 + $0x8] sm:$0xff]   ;;  %v1694_v42 = vld [vmem:[#allocation8 + $0x30] sm:$0xff]   ;;  %v1695_v43 = vld [vmem:[#allocation8 + $0x38] sm:$0xff]  }
  0x66   :  { %1464 = vmatpush3.bf16.msra.mxu0 %v1674_v3  ;;  %1484 = vmatpush3.bf16.msra.mxu1 %v1682_v8  ;;  %v1693_v41 = vld [vmem:[#allocation8 + $0x28] sm:$0xff]   ;;  %v449_v44 = vld [vmem:[#allocation5] sm:$0xff]  ;;  %v1702_v46 = vld [vmem:[#allocation7 + $0xb0] sm:$0xff]  }
  0x67   :  { %1465 = vmatprep.subr.bf16.mxu0 %v1925_v0  ;;  %1485 = vmatprep.subr.bf16.mxu1 %v1925_v0  ;;  %v450_v45 = vpack.c.bf16 %v449_v44, %v449_v44  ;;  %v1703_v47 = vld [vmem:[#allocation7 + $0xb8] sm:$0xff]   ;;  %v1284_v48 = vld [vmem:[%s2202_s3 + $0x1] ss:$0 sm:$0xff]  ;;  %v1704_v57 = vld [vmem:[#allocation8 + $0x40] sm:$0xff]  }
  0x68   :  { %v1705_v59 = vld [vmem:[#allocation8 + $0x48] sm:$0xff]   ;;  %v1706_v60 = vld [vmem:[#allocation8 + $0x50] sm:$0xff]   ;;  %v1707_v61 = vld [vmem:[#allocation8 + $0x58] sm:$0xff]  }
  0x69   :  { %v1708_v62 = vld [vmem:[#allocation8 + $0x60] sm:$0xff]   ;;  %v1709_v63 = vld [vmem:[#allocation8 + $0x68] sm:$0xff]   ;;  %v1710_v2 = vld [vmem:[#allocation8 + $0x70] sm:$0xff]  }
  0x6a   :  { %1466 = vmatpush3.bf16.msra.mxu0 %v1675_v5  ;;  %1486 = vmatpush3.bf16.msra.mxu1 %v1683_v10  ;;  %v1303_v1 = vld [vmem:[%s2204_s5] ss:$0 sm:$0xff]  ;;  %v1715_v14 = vld [vmem:[#allocation10 + $0x58] sm:$0xff]   ;;  %v1716_v15 = vld [vmem:[#allocation10 + $0x60] sm:$0xff]  }
  0x6b   :  { %1467 = vmatprep.subr.bf16.mxu0 %v1925_v0  ;;  %1487 = vmatprep.subr.bf16.mxu1 %v1925_v0  ;;  %v1729_v44 = vld [vmem:[#allocation10 + $0x8] sm:$0xff]  }
  0x6e   :  { %1468 = vmatpush3.bf16.msra.mxu0 %v1676_v7  ;;  %1488 = vmatpush3.bf16.msra.mxu1 %v1684_v12  ;;  %v1711_v7 = vld [vmem:[#allocation8 + $0x78] sm:$0xff]   ;;  %v1713_v12 = vld [vmem:[#allocation10 + $0x48] sm:$0xff]  }
  0x6f   :  { %1469 = vmatprep.subr.bf16.mxu0 %v1925_v0  ;;  %1489 = vmatprep.subr.bf16.mxu1 %v1925_v0 }
  0x72   :  { %1470 = vmatpush3.bf16.msra.mxu0 %v1677_v9  ;;  %1490 = vmatpush3.bf16.msra.mxu1 %v1685_v16  ;;  %v1717_v16 = vld [vmem:[#allocation10 + $0x68] sm:$0xff]  }
  0x73   :  { %1471 = vmatprep.subr.bf16.mxu0 %v1925_v0  ;;  %1491 = vmatprep.subr.bf16.mxu1 %v1925_v0 }
  0x76   :  { %1472 = vmatpush3.bf16.msra.mxu0 %v1678_v11  ;;  %1492 = vmatpush3.bf16.msra.mxu1 %v1686_v18  ;;  %v1712_v11 = vld [vmem:[#allocation10 + $0x40] sm:$0xff]   ;;  %v1719_v18 = vld [vmem:[#allocation10 + $0x78] sm:$0xff]  }
  0x77   :  { %1473 = vmatprep.subr.bf16.mxu0 %v1925_v0  ;;  %1493 = vmatprep.subr.bf16.mxu1 %v1925_v0 }
  0x7a   :  { %1474 = vmatpush3.bf16.msra.mxu0 %v1679_v13  ;;  %1494 = vmatpush3.bf16.msra.mxu1 %v1687_v19  ;;  %v1714_v13 = vld [vmem:[#allocation10 + $0x50] sm:$0xff]   ;;  %v1720_v19 = vld [vmem:[#allocation8 + $0x80] sm:$0xff]  }
  0x7b   :  { %1499 = vmatprep.subr.bf16.mxu0 %v1925_v0  ;;  %1519 = vmatprep.subr.bf16.mxu1 %v1925_v0 }
  0x7d   :  { %1476 = vmatmul.mubr.bf16.vlgmr.msra.gmra.mrb[0].mxu0 %v102_v17  ;;  %v1718_v17 = vld [vmem:[#allocation10 + $0x70] sm:$0xff]  }
  0x7e   :  { %1515 = vmatprep.mubr.msk.bf16.mxu0 %vm1926_vm0, %v1925_v0  ;;  %1500 = vmatpush3.bf16.msra.mxu0 %v1696_v20  ;;  %v1721_v20 = vld [vmem:[#allocation8 + $0x88] sm:$0xff]  }
  0x7f   :  { %1501 = vmatprep.subr.bf16.mxu0 %v1925_v0 }
  0x82   :  { %1502 = vmatpush3.bf16.msra.mxu0 %v1697_v21  ;;  %v1722_v21 = vld [vmem:[#allocation8 + $0x90] sm:$0xff]  }
  0x83   :  { %1503 = vmatprep.subr.bf16.mxu0 %v1925_v0 }
  0x86   :  { %1504 = vmatpush3.bf16.msra.mxu0 %v1698_v22  ;;  %v1723_v22 = vld [vmem:[#allocation8 + $0x98] sm:$0xff]  }
  0x87   :  { %1505 = vmatprep.subr.bf16.mxu0 %v1925_v0 }
  0x8a   :  { %1506 = vmatpush3.bf16.msra.mxu0 %v1699_v23  ;;  %v1724_v23 = vld [vmem:[#allocation8 + $0xa0] sm:$0xff]  }
  0x8b   :  { %1507 = vmatprep.subr.bf16.mxu0 %v1925_v0 }
  0x8e   :  { %1508 = vmatpush3.bf16.msra.mxu0 %v1700_v24  ;;  %v1725_v24 = vld [vmem:[#allocation8 + $0xa8] sm:$0xff]  }
  0x8f   :  { %1509 = vmatprep.subr.bf16.mxu0 %v1925_v0 }
  0x92   :  { %1510 = vmatpush3.bf16.msra.mxu0 %v1701_v25  ;;  %v1726_v25 = vld [vmem:[#allocation8 + $0xb0] sm:$0xff]  }
  0x93   :  { %1511 = vmatprep.subr.bf16.mxu0 %v1925_v0 }
  0x96   :  { %1512 = vmatpush3.bf16.msra.mxu0 %v1702_v46  ;;  %v1731_v46 = vld [vmem:[#allocation10 + $0x18] sm:$0xff]  }
  0x97   :  { %1513 = vmatprep.subr.bf16.mxu0 %v1925_v0 }
  0x9a   :  { %1514 = vmatpush3.bf16.msra.mxu0 %v1703_v47  ;;  %v1732_v47 = vld [vmem:[#allocation10 + $0x20] sm:$0xff]  }
  0x9b   :  { %1539 = vmatprep.subr.bf16.mxu0 %v1925_v0 }
 0x150   :  { %v208_v27 = vpop.f32.mrb[0].mxu0 }
 0x151   :  { %v209_v28 = vadd.f32 %v1274_v26, %v208_v27  ;;  %v1477_v29 = vpop.f32.mrb[1].mxu0  ;;  %v1294_v27 = vld [vmem:[%s2202_s3 + $0x2] ss:$0 sm:$0xff] }
 0x152   :  { %v211_v30 = vpop.f32.mrb[2].mxu0 }
 0x153   :  { %v212_v31 = vadd.f32 %v1274_v26, %v211_v30  ;;  %v1478_v32 = vpop.f32.mrb[3].mxu0  ;;  %v215_v33 = vmax.f32 %v209_v28, 0.0  ;;  %v1727_v26 = vld [vmem:[#allocation8 + $0xb8] sm:$0xff]  }
 0x155   :  { %v216_v34 = vmax.f32 %v212_v31, 0.0 }
 0x157   :  { %v217_v36 = vpack.c.bf16 %v216_v34, %v215_v33 }
 0x159   :  { %1496 = vmatmul.mubr.bf16.vlgmr.msra.gmra.mrb[0].mxu1 %v217_v36 }
 0x15a   :  { %1520 = vmatpush3.bf16.msra.mxu1 %v1688_v35  ;;  %1535 = vmatprep.mubr.msk.bf16.mxu1 %vm1926_vm0, %v1925_v0  ;;  %v1313_v35 = vld [vmem:[%s2204_s5 + $0x1] ss:$0 sm:$0xff] }
 0x15b   :  { %1521 = vmatprep.subr.bf16.mxu1 %v1925_v0 }
 0x15e   :  { %1522 = vmatpush3.bf16.msra.mxu1 %v1689_v37 }
 0x15f   :  { %1523 = vmatprep.subr.bf16.mxu1 %v1925_v0 }
 0x162   :  { %1524 = vmatpush3.bf16.msra.mxu1 %v1690_v38 }
 0x163   :  { %1525 = vmatprep.subr.bf16.mxu1 %v1925_v0 }
 0x166   :  { %1526 = vmatpush3.bf16.msra.mxu1 %v1691_v39 }
 0x167   :  { %1527 = vmatprep.subr.bf16.mxu1 %v1925_v0 }
 0x16a   :  { %1528 = vmatpush3.bf16.msra.mxu1 %v1692_v40 }
 0x16b   :  { %1529 = vmatprep.subr.bf16.mxu1 %v1925_v0 }
 0x16e   :  { %1530 = vmatpush3.bf16.msra.mxu1 %v1693_v41 }
 0x16f   :  { %1531 = vmatprep.subr.bf16.mxu1 %v1925_v0 }
 0x172   :  { %1532 = vmatpush3.bf16.msra.mxu1 %v1694_v42  ;;  %v1728_v42 = vld [vmem:[#allocation10] sm:$0xff]  }
 0x173   :  { %1533 = vmatprep.subr.bf16.mxu1 %v1925_v0 }
 0x176   :  { %1534 = vmatpush3.bf16.msra.mxu1 %v1695_v43 }
 0x177   :  { %1559 = vmatprep.subr.bf16.mxu1 %v1925_v0 }
 0x179   :  { %1536 = vmatmul.mubr.bf16.vlgmr.msra.gmra.mrb[4].mxu1 %v450_v45  ;;  %v1730_v45 = vld [vmem:[#allocation10 + $0x10] sm:$0xff]  }
 0x17a   :  { %1575 = vmatprep.mubr.msk.bf16.mxu1 %vm1926_vm0, %v1925_v0  ;;  %1560 = vmatpush3.bf16.msra.mxu1 %v1720_v19 }
 0x17b   :  { %1561 = vmatprep.subr.bf16.mxu1 %v1925_v0 }
 0x17e   :  { %1562 = vmatpush3.bf16.msra.mxu1 %v1721_v20 }
 0x17f   :  { %1563 = vmatprep.subr.bf16.mxu1 %v1925_v0 }
 0x182   :  { %1564 = vmatpush3.bf16.msra.mxu1 %v1722_v21 }
 0x183   :  { %1565 = vmatprep.subr.bf16.mxu1 %v1925_v0 }
 0x186   :  { %1566 = vmatpush3.bf16.msra.mxu1 %v1723_v22  ;;  %v1750_v22 = vld [vmem:[#allocation10 + $0xf0] sm:$0xff]  }
 0x187   :  { %1567 = vmatprep.subr.bf16.mxu1 %v1925_v0 }
 0x18a   :  { %1568 = vmatpush3.bf16.msra.mxu1 %v1724_v23  ;;  %v1751_v23 = vld [vmem:[#allocation10 + $0xf8] sm:$0xff]  }
 0x18b   :  { %1569 = vmatprep.subr.bf16.mxu1 %v1925_v0 }
 0x18e   :  { %1570 = vmatpush3.bf16.msra.mxu1 %v1725_v24  ;;  %v1350_v24 = vld [vmem:[%s2206_s7 + $0x1] ss:$0 sm:$0xff] }
 0x18f   :  { %1571 = vmatprep.subr.bf16.mxu1 %v1925_v0 }
 0x192   :  { %1572 = vmatpush3.bf16.msra.mxu1 %v1726_v25 }
 0x193   :  { %1573 = vmatprep.subr.bf16.mxu1 %v1925_v0 }
 0x196   :  { %1574 = vmatpush3.bf16.msra.mxu1 %v1727_v26 }
 0x197   :  { %1599 = vmatprep.subr.bf16.mxu1 %v1925_v0 }
 0x22c   :  { %v325_v49 = vpop.f32.mrb[0].mxu1 }
 0x22d   :  { %v326_v50 = vadd.f32 %v1284_v48, %v325_v49  ;;  %v1497_v51 = vpop.f32.mrb[1].mxu1  ;;  %v1734_v49 = vld [vmem:[#allocation10 + $0x30] sm:$0xff]  }
 0x22e   :  { %v328_v52 = vpop.f32.mrb[2].mxu1 }
 0x22f   :  { %v329_v53 = vadd.f32 %v1284_v48, %v328_v52  ;;  %v1498_v54 = vpop.f32.mrb[3].mxu1  ;;  %v332_v55 = vmax.f32 %v326_v50, 0.0  ;;  %v1733_v48 = vld [vmem:[#allocation10 + $0x28] sm:$0xff]   ;;  %v1735_v50 = vld [vmem:[#allocation10 + $0x38] sm:$0xff]   ;;  %v1736_v52 = vld [vmem:[#allocation10 + $0x80] sm:$0xff]  }
 0x230   :  { %v1738_v54 = vld [vmem:[#allocation10 + $0x90] sm:$0xff]  }
 0x231   :  { %v333_v56 = vmax.f32 %v329_v53, 0.0  ;;  %v1737_v53 = vld [vmem:[#allocation10 + $0x88] sm:$0xff]  }
 0x233   :  { %v334_v58 = vpack.c.bf16 %v333_v56, %v332_v55  ;;  %v1739_v55 = vld [vmem:[#allocation10 + $0x98] sm:$0xff]   ;;  %v1740_v56 = vld [vmem:[#allocation10 + $0xa0] sm:$0xff]  }
 0x235   :  { %1516 = vmatmul.mubr.bf16.vlgmr.msra.gmra.mrb[4].mxu0 %v334_v58  ;;  %v1742_v58 = vld [vmem:[#allocation10 + $0xb0] sm:$0xff]  }
 0x236   :  { %1540 = vmatpush3.bf16.msra.mxu0 %v1704_v57  ;;  %1555 = vmatprep.mubr.msk.bf16.mxu0 %vm1926_vm0, %v1925_v0  ;;  %v1741_v57 = vld [vmem:[#allocation10 + $0xa8] sm:$0xff]  }
 0x237   :  { %1541 = vmatprep.subr.bf16.mxu0 %v1925_v0 }
 0x23a   :  { %1542 = vmatpush3.bf16.msra.mxu0 %v1705_v59  ;;  %v1743_v59 = vld [vmem:[#allocation10 + $0xb8] sm:$0xff]  }
 0x23b   :  { %1543 = vmatprep.subr.bf16.mxu0 %v1925_v0 }
 0x23e   :  { %1544 = vmatpush3.bf16.msra.mxu0 %v1706_v60  ;;  %v1744_v60 = vld [vmem:[#allocation10 + $0xc0] sm:$0xff]  }
 0x23f   :  { %1545 = vmatprep.subr.bf16.mxu0 %v1925_v0 }
 0x242   :  { %1546 = vmatpush3.bf16.msra.mxu0 %v1707_v61  ;;  %v1745_v61 = vld [vmem:[#allocation10 + $0xc8] sm:$0xff]  }
 0x243   :  { %1547 = vmatprep.subr.bf16.mxu0 %v1925_v0 }
 0x246   :  { %1548 = vmatpush3.bf16.msra.mxu0 %v1708_v62  ;;  %v1746_v62 = vld [vmem:[#allocation10 + $0xd0] sm:$0xff]  }
 0x247   :  { %1549 = vmatprep.subr.bf16.mxu0 %v1925_v0 }
 0x24a   :  { %1550 = vmatpush3.bf16.msra.mxu0 %v1709_v63  ;;  %v1747_v63 = vld [vmem:[#allocation10 + $0xd8] sm:$0xff]  }
 0x24b   :  { %1551 = vmatprep.subr.bf16.mxu0 %v1925_v0 }
 0x24c   :  { %v556_v3 = vpop.f32.mrb[4].mxu1 }
 0x24d   :  { %v557_v4 = vadd.f32 %v1303_v1, %v556_v3  ;;  %v1537_v5 = vpop.f32.mrb[5].mxu1  ;;  %v1748_v1 = vld [vmem:[#allocation10 + $0xe0] sm:$0xff]  }
 0x24e   :  { %v559_v6 = vpop.f32.mrb[6].mxu1  ;;  %1552 = vmatpush3.bf16.msra.mxu0 %v1710_v2  ;;  %v1749_v2 = vld [vmem:[#allocation10 + $0xe8] sm:$0xff]  }
 0x24f   :  { %v562_v8 = vmax.f32 %v557_v4, 0.0  ;;  %v1538_v9 = vpop.f32.mrb[7].mxu1  ;;  %1553 = vmatprep.subr.bf16.mxu0 %v1925_v0 }
 0x251   :  { %v563_v10 = vpack.c.bf16 %v562_v8, %v562_v8 }
 0x252   :  { %1554 = vmatpush3.bf16.msra.mxu0 %v1711_v7  ;;  %v1323_v7 = vld [vmem:[%s2204_s5 + $0x2] ss:$0 sm:$0xff] }
 0x253   :  { %1579 = vmatprep.subr.bf16.mxu0 %v1925_v0 }
 0x255   :  { %1556 = vmatmul.mubr.bf16.vlgmr.msra.gmra.mrb[8].mxu0 %v563_v10 }
 0x256   :  { %1580 = vmatpush3.bf16.msra.mxu0 %v1712_v11  ;;  %1595 = vmatprep.mubr.msk.bf16.mxu0 %vm1926_vm0, %v1925_v0 }
 0x257   :  { %1581 = vmatprep.subr.bf16.mxu0 %v1925_v0 }
 0x25a   :  { %1582 = vmatpush3.bf16.msra.mxu0 %v1713_v12 }
 0x25b   :  { %1583 = vmatprep.subr.bf16.mxu0 %v1925_v0 }
 0x25e   :  { %1584 = vmatpush3.bf16.msra.mxu0 %v1714_v13 }
 0x25f   :  { %1585 = vmatprep.subr.bf16.mxu0 %v1925_v0 }
 0x262   :  { %1586 = vmatpush3.bf16.msra.mxu0 %v1715_v14  ;;  %v1348_v14 = vld [vmem:[%s2206_s7] ss:$0 sm:$0xff] }
 0x263   :  { %1587 = vmatprep.subr.bf16.mxu0 %v1925_v0 }
 0x266   :  { %1588 = vmatpush3.bf16.msra.mxu0 %v1716_v15 }
 0x267   :  { %1589 = vmatprep.subr.bf16.mxu0 %v1925_v0 }
 0x26a   :  { %1590 = vmatpush3.bf16.msra.mxu0 %v1717_v16 }
 0x26b   :  { %1591 = vmatprep.subr.bf16.mxu0 %v1925_v0 }
 0x26e   :  { %1592 = vmatpush3.bf16.msra.mxu0 %v1718_v17 }
 0x26f   :  { %1593 = vmatprep.subr.bf16.mxu0 %v1925_v0 }
 0x272   :  { %1594 = vmatpush3.bf16.msra.mxu0 %v1719_v18 }
 0x273   :  { %1619 = vmatprep.subr.bf16.mxu0 %v1925_v0 }
 0x308   :  { %v442_v28 = vpop.f32.mrb[4].mxu0 }
 0x309   :  { %v443_v29 = vadd.f32 %v1294_v27, %v442_v28  ;;  %v1517_v30 = vpop.f32.mrb[5].mxu0 }
 0x30a   :  { %v445_v31 = vpop.f32.mrb[6].mxu0 }
 0x30b   :  { %v446_v32 = vadd.f32 %v1294_v27, %v445_v31  ;;  %v1518_v33 = vpop.f32.mrb[7].mxu0  ;;  %v793_v51 = vpack.c.bf16 %v443_v29, %v443_v29 }
 0x30d   :  { %v810_v34 = vpack.c.bf16 %v446_v32, %v446_v32 }
 0x30f   :  { %1596 = vmatmul.mubr.bf16.vlgmr.msra.gmra.mrb[12].mxu0 %v810_v34 }
 0x310   :  { %1635 = vmatprep.mubr.msk.bf16.mxu0 %vm1926_vm0, %v1925_v0  ;;  %1620 = vmatpush3.bf16.msra.mxu0 %v1736_v52 }
 0x311   :  { %1621 = vmatprep.subr.bf16.mxu0 %v1925_v0 }
 0x314   :  { %1622 = vmatpush3.bf16.msra.mxu0 %v1737_v53 }
 0x315   :  { %1623 = vmatprep.subr.bf16.mxu0 %v1925_v0 }
 0x318   :  { %1624 = vmatpush3.bf16.msra.mxu0 %v1738_v54 }
 0x319   :  { %1625 = vmatprep.subr.bf16.mxu0 %v1925_v0 }
 0x31c   :  { %1626 = vmatpush3.bf16.msra.mxu0 %v1739_v55 }
 0x31d   :  { %1627 = vmatprep.subr.bf16.mxu0 %v1925_v0 }
 0x320   :  { %1628 = vmatpush3.bf16.msra.mxu0 %v1740_v56 }
 0x321   :  { %1629 = vmatprep.subr.bf16.mxu0 %v1925_v0 }
 0x324   :  { %1630 = vmatpush3.bf16.msra.mxu0 %v1741_v57 }
 0x325   :  { %1631 = vmatprep.subr.bf16.mxu0 %v1925_v0 }
 0x328   :  { %v671_v36 = vpop.f32.mrb[8].mxu0  ;;  %1632 = vmatpush3.bf16.msra.mxu0 %v1742_v58 }
 0x329   :  { %v672_v37 = vadd.f32 %v1313_v35, %v671_v36  ;;  %v1557_v38 = vpop.f32.mrb[9].mxu0  ;;  %1633 = vmatprep.subr.bf16.mxu0 %v1925_v0 }
 0x32a   :  { %v674_v39 = vpop.f32.mrb[10].mxu0 }
 0x32b   :  { %v677_v40 = vmax.f32 %v672_v37, 0.0  ;;  %v1558_v41 = vpop.f32.mrb[11].mxu0 }
 0x32c   :  { %1634 = vmatpush3.bf16.msra.mxu0 %v1743_v59 }
 0x32d   :  { %v678_v43 = vpack.c.bf16 %v677_v40, %v677_v40 }
 0x32f   :  { %1576 = vmatmul.mubr.bf16.vlgmr.msra.gmra.mrb[8].mxu1 %v678_v43 }
 0x330   :  { %1600 = vmatpush3.bf16.msra.mxu1 %v1728_v42  ;;  %1615 = vmatprep.mubr.msk.bf16.mxu1 %vm1926_vm0, %v1925_v0 }
 0x331   :  { %1601 = vmatprep.subr.bf16.mxu1 %v1925_v0 }
 0x334   :  { %1602 = vmatpush3.bf16.msra.mxu1 %v1729_v44 }
 0x335   :  { %1603 = vmatprep.subr.bf16.mxu1 %v1925_v0 }
 0x338   :  { %1604 = vmatpush3.bf16.msra.mxu1 %v1730_v45 }
 0x339   :  { %1605 = vmatprep.subr.bf16.mxu1 %v1925_v0 }
 0x33c   :  { %1606 = vmatpush3.bf16.msra.mxu1 %v1731_v46 }
 0x33d   :  { %1607 = vmatprep.subr.bf16.mxu1 %v1925_v0 }
 0x340   :  { %1608 = vmatpush3.bf16.msra.mxu1 %v1732_v47 }
 0x341   :  { %1609 = vmatprep.subr.bf16.mxu1 %v1925_v0 }
 0x344   :  { %1610 = vmatpush3.bf16.msra.mxu1 %v1733_v48 }
 0x345   :  { %1611 = vmatprep.subr.bf16.mxu1 %v1925_v0 }
 0x348   :  { %1612 = vmatpush3.bf16.msra.mxu1 %v1734_v49 }
 0x349   :  { %1613 = vmatprep.subr.bf16.mxu1 %v1925_v0 }
 0x34c   :  { %1614 = vmatpush3.bf16.msra.mxu1 %v1735_v50 }
 0x34d   :  { %1639 = vmatprep.subr.bf16.mxu1 %v1925_v0 }
 0x34f   :  { %1616 = vmatmul.mubr.bf16.vlgmr.msra.gmra.mrb[12].mxu1 %v793_v51 }
 0x350   :  { %1655 = vmatprep.mubr.msk.bf16.mxu1 %vm1926_vm0, %v1925_v0  ;;  %1640 = vmatpush3.bf16.msra.mxu1 %v1744_v60 }
 0x351   :  { %1641 = vmatprep.subr.bf16.mxu1 %v1925_v0 }
 0x354   :  { %1642 = vmatpush3.bf16.msra.mxu1 %v1745_v61 }
 0x355   :  { %1643 = vmatprep.subr.bf16.mxu1 %v1925_v0 }
 0x358   :  { %1644 = vmatpush3.bf16.msra.mxu1 %v1746_v62 }
 0x359   :  { %1645 = vmatprep.subr.bf16.mxu1 %v1925_v0 }
 0x35c   :  { %1646 = vmatpush3.bf16.msra.mxu1 %v1747_v63 }
 0x35d   :  { %1647 = vmatprep.subr.bf16.mxu1 %v1925_v0 }
 0x360   :  { %1648 = vmatpush3.bf16.msra.mxu1 %v1748_v1 }
 0x361   :  { %1649 = vmatprep.subr.bf16.mxu1 %v1925_v0 }
 0x364   :  { %1650 = vmatpush3.bf16.msra.mxu1 %v1749_v2 }
 0x365   :  { %1651 = vmatprep.subr.bf16.mxu1 %v1925_v0 }
 0x368   :  { %1652 = vmatpush3.bf16.msra.mxu1 %v1750_v22 }
 0x369   :  { %1653 = vmatprep.subr.bf16.mxu1 %v1925_v0 }
 0x36c   :  { %1654 = vmatpush3.bf16.msra.mxu1 %v1751_v23 }
 0x3e2   :  { %v910_v3 = vpop.f32.mrb[12].mxu0 }
 0x3e3   :  { %v1597_v4 = vpop.f32.mrb[13].mxu0 }
 0x3e4   :  { %v913_v5 = vpop.f32.mrb[14].mxu0 }
 0x3e5   :  { %v1598_v6 = vpop.f32.mrb[15].mxu0 }
 0x402   :  { %v786_v8 = vpop.f32.mrb[8].mxu1 }
 0x403   :  { %v787_v9 = vadd.f32 %v1323_v7, %v786_v8  ;;  %v1577_v10 = vpop.f32.mrb[9].mxu1 }
 0x404   :  { %v789_v11 = vpop.f32.mrb[10].mxu1 }
 0x405   :  { %792 = vst [vmem:[#allocation11] sm:$0xff] %v787_v9  ;;  %v1578_v12 = vpop.f32.mrb[11].mxu1 }
 0x422   :  { %v998_v13 = vpop.f32.mrb[12].mxu1 }
 0x423   :  { %v999_v15 = vadd.f32 %v998_v13, %v910_v3  ;;  %v1617_v16 = vpop.f32.mrb[13].mxu1 }
 0x424   :  { %v1001_v17 = vpop.f32.mrb[14].mxu1 }
 0x425   :  { %v1011_v18 = vadd.f32 %v1348_v14, %v999_v15  ;;  %v1618_v19 = vpop.f32.mrb[15].mxu1 }
 0x427   :  { %v1012_v20 = vmax.f32 %v1011_v18, 0.0 }
 0x429   :  { %v1013_v21 = vpack.c.bf16 %v1012_v20, %v1012_v20 }
 0x42b   :  { %1636 = vmatmul.mubr.bf16.vlgmr.msra.gmra.mrb[16].mxu0 %v1013_v21 }
 0x4fe   :  { %v1121_v25 = vpop.f32.mrb[16].mxu0 }
 0x4ff   :  { %v1122_v26 = vadd.f32 %v1350_v24, %v1121_v25  ;;  %v1637_v27 = vpop.f32.mrb[17].mxu0 }
 0x500   :  { %v1124_v28 = vpop.f32.mrb[18].mxu0 }
 0x501   :  { %v1127_v29 = vmax.f32 %v1122_v26, 0.0  ;;  %v1638_v30 = vpop.f32.mrb[19].mxu0 }
 0x503   :  { %v1128_v31 = vpack.c.bf16 %v1127_v29, %v1127_v29 }
 0x505   :  { %1656 = vmatmul.mubr.bf16.vlgmr.msra.gmra.mrb[16].mxu1 %v1128_v31 }
 0x506   :  { %1873 = shalt.err (!%p1870_p2)
}
 0x507   :  { %s1874_s23 = scalar_lea.hbm %s2207_s8, 128 }
 0x508   :  { %p1875_p3 = scmp.ne.s32.totalorder %s2207_s8, %s1874_s23  ;;  %p1878_p4 = scmp.lt.u32.totalorder %s1874_s23, %s2207_s8 }
 0x50a   :  { %p1880_p5 = pnand %p1878_p4, %p1875_p3 }
 0x50c   :  { %1883 = shalt.err (!%p1880_p5)
}
 0x50d   :  { %1252 = dma.vmem_to_hbm [thread:$0]  %s1250_s18, 128, %s2207_s8, [#allocation4]   ;;  %v1360_v0 = vld [vmem:[%s2206_s7 + $0x2] ss:$0 sm:$0xff] }
 0x50e   :  { %s1928_s12 = smov [#allocation12]  }
 0x50f   :  { %s1259_s28 = sshll.u32 %s1928_s12, 4  ;;  %s1260_s28 = int_to_ptr.vmem [resolvable:$true] %s1259_s28 }
 0x510   :  { %s1884_s29 = scalar_lea.vmem %s1260_s28, 128  ;;  %p1889_p7 = scmp.lt.s32.totalorder %s1260_s28, %s1260_s28 }
 0x511   :  { %p1885_p6 = scmp.ne.s32.totalorder %s1260_s28, %s1884_s29  ;;  %p1890_p8 = scmp.lt.s32.totalorder %s1884_s29, %s1884_s29 }
 0x513   :  { %p1891_p9 = por %p1890_p8, %p1889_p7 }
 0x515   :  { %p1892_p10 = pnand %p1891_p9, %p1885_p6 }
 0x5d8   :  { %v1236_v32 = vpop.f32.mrb[16].mxu1 }
 0x5d9   :  { %v1237_v33 = vadd.f32 %v1360_v0, %v1236_v32  ;;  %v1657_v34 = vpop.f32.mrb[17].mxu1 }
 0x5da   :  { %v1239_v35 = vpop.f32.mrb[18].mxu1 }
 0x5db   :  { %1242 = vst [vmem:[#allocation12] sm:$0xff] %v1237_v33  ;;  %v1658_v36 = vpop.f32.mrb[19].mxu1 }
 0x5dc   :  { %1895 = shalt.err (!%p1892_p10)
}
 0x5dd   :  { %s1896_s7 = scalar_lea.hbm %s2208_s9, 128 }
 0x5de   :  { %p1897_p11 = scmp.ne.s32.totalorder %s2208_s9, %s1896_s7  ;;  %p1900_p12 = scmp.lt.u32.totalorder %s1896_s7, %s2208_s9 }
 0x5e0   :  { %p1902_p13 = pnand %p1900_p12, %p1897_p11 }
 0x5e2   :  { %1905 = shalt.err (!%p1902_p13)
}
 0x5e3   :  { %1262 = dma.vmem_to_hbm [thread:$0]  %s1260_s28, 128, %s2208_s9, [#allocation13]  }
 0x5e4   :  { %1912 = dma.done.wait [#allocation4], 128  }
 0x5e5   :  { %1913 = vsyncadd [#allocation4], 4294967168 }
 0x5e6   :  { %1914 = dma.done.wait [#allocation13], 128  }
 0x5e7   :  { %1915 = vsyncadd [#allocation13], 4294967168 }
 0x5e8   :  { %1269 = vsyncpa [#allocation3], 1 }
 0x5e9   :  { %1270 = vsyncpa [#allocation6], 1 }
 0x5ea   :  { %1271 = vsyncpa [#allocation9], 1 }
 0x5eb   :  { %1272 = vsyncpa [#allocation4], 1 }
 0x5ec   :  { %1273 = vsyncpa [#allocation13], 1 }

</bundles_post_ra>
